<compile_context>
chip_gen: v6e
topology: v6e:2x2x1
jax: 0.10.0
libtpu: 0.0.40
codegen_flags: <defaults>
</compile_context>

<pallas_src>
import jax
import jax.numpy as jnp
from jax.experimental import pallas as pl
from jax.experimental.pallas import tpu as pltpu

K_IN = 25     # input features (5*5), fed unpadded
H1 = 32
H2 = 512
N_OUT = 10    # real logits
N_PAD = 16    # logits padded 10 -> 16 for the output block (minimal extra bytes)

TB_CAP = 2048  # batch-tile cap; working set ~5-6 MB, fits all default VMEM limits


def mlp_kernel(x_ref, w1_ref, b1_ref, w2_ref, b2_ref, w3_ref, b3_ref, o_ref):
    # x: (TB, 25) f32 (raw input tile; cast/pad handled implicitly by the dot)
    x = x_ref[...]

    # Layer 1: (TB,25) @ (25,32) -> f32, +bias, ReLU
    h1 = jnp.dot(x, w1_ref[...], preferred_element_type=jnp.float32) + b1_ref[...]
    h1 = jnp.maximum(h1, 0.0)

    # Layer 2: (TB,32) @ (32,512)
    h2 = jnp.dot(h1, w2_ref[...], preferred_element_type=jnp.float32) + b2_ref[...]
    h2 = jnp.maximum(h2, 0.0)

    # Layer 3: (TB,512) @ (512,16)  (columns 10..15 of W/b are zero padding)
    out = jnp.dot(h2, w3_ref[...], preferred_element_type=jnp.float32) + b3_ref[...]
    o_ref[...] = out.astype(o_ref.dtype)


def _round_up(n, m):
    return ((n + m - 1) // m) * m


def _choose_tb(B):
    # Aim for >=4 grid steps (>=2 per TensorCore on v7x) when B allows,
    # cap at TB_CAP to amortize the ~0.35us per-grid-step overhead.
    tb = _round_up(max(1, -(-B // 4)), 8)
    return max(8, min(TB_CAP, tb))


def mlp_classifier_forward(x, params):
    """x: (B, 5, 5) float32 (or any shape flattening to (B, 25)). Returns (B, 10) f32."""
    B = x.shape[0]
    w1, b1, w2, b2, w3, b3 = params

    # Flatten only (no dtype change, no feature padding) -> kernel reads raw f32.
    x_flat = x.reshape(B, -1).astype(jnp.float32)     # (B, 25)
    K = x_flat.shape[1]

    TB = _choose_tb(B)
    B_pad = _round_up(B, TB)
    if B_pad != B:
        x_flat = jnp.pad(x_flat, ((0, B_pad - B), (0, 0)))

    # Weights in (in, out) layout, f32. Only layer 3 is padded (10 -> 16 cols).
    w1p = w1.astype(jnp.float32)                                                # (25, 32)
    w2p = w2.astype(jnp.float32)                                                # (32, 512)
    w3p = jnp.pad(w3.astype(jnp.float32), ((0, 0), (0, N_PAD - w3.shape[1])))   # (512, 16)
    b1p = b1.astype(jnp.float32)                                                # (1, 32)
    b2p = b2.astype(jnp.float32)                                                # (1, 512)
    b3p = jnp.pad(b3.astype(jnp.float32), ((0, 0), (0, N_PAD - b3.shape[1])))   # (1, 16)

    grid = (B_pad // TB,)

    # Weights/biases: constant index_map -> resident in VMEM, DMA'd once.
    const = lambda a: pl.BlockSpec(a.shape, lambda i: (0, 0))

    out = pl.pallas_call(
        mlp_kernel,
        out_shape=jax.ShapeDtypeStruct((B_pad, N_PAD), jnp.float32),
        grid=grid,
        in_specs=[
            pl.BlockSpec((TB, K), lambda i: (i, 0)),   # x tile (pipelined)
            const(w1p), const(b1p),
            const(w2p), const(b2p),
            const(w3p), const(b3p),
        ],
        out_specs=pl.BlockSpec((TB, N_PAD), lambda i: (i, 0)),
        compiler_params=pltpu.CompilerParams(
            dimension_semantics=("parallel",),
        ),
    )(x_flat, w1p, b1p, w2p, b2p, w3p, b3p)

    return out[:B, :N_OUT]


def init_params(key):
    """Deterministic init mimicking torch.nn.Linear default (U(-1/sqrt(fan_in), +))."""
    dims = [(25, 32), (32, 512), (512, 10)]
    params = []
    for fan_in, fan_out in dims:
        kw, kb, key = jax.random.split(key, 3)
        bound = 1.0 / (fan_in ** 0.5)
        w = jax.random.uniform(kw, (fan_in, fan_out), jnp.float32, -bound, bound)
        b = jax.random.uniform(kb, (1, fan_out), jnp.float32, -bound, bound)
        params.extend([w, b])
    return tuple(params)


if __name__ == "__main__":
    key = jax.random.PRNGKey(0)
    kx, kp = jax.random.split(key)

    B = 8
    x = jax.random.normal(kx, (B, 5, 5), jnp.float32)  # flattens to (B, 25)
    params = init_params(kp)

    out = mlp_classifier_forward(x, params)
    out = jax.block_until_ready(out)

    # Pure-JAX f32 reference (kernel is now f32 end-to-end, so tolerance is tight).
    w1, b1, w2, b2, w3, b3 = params
    xf = x.reshape(B, -1)
    ref = jnp.maximum(xf @ w1 + b1, 0.0)
    ref = jnp.maximum(ref @ w2 + b2, 0.0)
    ref = ref @ w3 + b3

    assert out.shape == (B, N_OUT)
    assert jnp.allclose(out, ref, atol=1e-3, rtol=1e-3), (
        f"max abs err = {jnp.max(jnp.abs(out - ref))}")
    print("KERNEL_OK")
</pallas_src>

<mosaic_0001>
module attributes {stable_mosaic.version = 11 : i64} {
  func.func @mlp_kernel(%arg0: i32, %arg1: memref<8x25xf32, #tpu.memory_space<vmem>>, %arg2: memref<25x32xf32, #tpu.memory_space<vmem>>, %arg3: memref<1x32xf32, #tpu.memory_space<vmem>>, %arg4: memref<32x512xf32, #tpu.memory_space<vmem>>, %arg5: memref<1x512xf32, #tpu.memory_space<vmem>>, %arg6: memref<512x16xf32, #tpu.memory_space<vmem>>, %arg7: memref<1x16xf32, #tpu.memory_space<vmem>>, %arg8: memref<8x16xf32, #tpu.memory_space<vmem>>) attributes {dimension_semantics = [#tpu.dimension_semantics<parallel>], iteration_bounds = array<i64: 1>, scalar_prefetch = 0 : i64, scratch_operands = 0 : i64, tpu.core_type = #tpu.core_type<tc>, window_params = [{transform_indices = @transform_0, window_bounds = array<i64: 8, 25>}, {pipeline_mode = #tpu.pipeline_mode<synchronous>, transform_indices = @transform_1, window_bounds = array<i64: 25, 32>}, {pipeline_mode = #tpu.pipeline_mode<synchronous>, transform_indices = @transform_2, window_bounds = array<i64: 1, 32>}, {pipeline_mode = #tpu.pipeline_mode<synchronous>, transform_indices = @transform_3, window_bounds = array<i64: 32, 512>}, {pipeline_mode = #tpu.pipeline_mode<synchronous>, transform_indices = @transform_4, window_bounds = array<i64: 1, 512>}, {pipeline_mode = #tpu.pipeline_mode<synchronous>, transform_indices = @transform_5, window_bounds = array<i64: 512, 16>}, {pipeline_mode = #tpu.pipeline_mode<synchronous>, transform_indices = @transform_6, window_bounds = array<i64: 1, 16>}, {transform_indices = @transform_7, window_bounds = array<i64: 8, 16>}]} {
    %c0 = arith.constant 0 : index
    %c0_0 = arith.constant 0 : index
    %0 = vector.load %arg1[%c0, %c0_0] : memref<8x25xf32, #tpu.memory_space<vmem>>, vector<8x25xf32>
    %c0_1 = arith.constant 0 : index
    %c0_2 = arith.constant 0 : index
    %1 = vector.load %arg2[%c0_1, %c0_2] : memref<25x32xf32, #tpu.memory_space<vmem>>, vector<25x32xf32>
    %cst = arith.constant dense<0.000000e+00> : vector<8x32xf32>
    %2 = tpu.matmul %0, %1, %cst {dimension_numbers = #tpu.dot_dimension_numbers<[1], [0], [0], [1], [0, 0, 1, 1], [], []>} : vector<8x25xf32>, vector<25x32xf32>, vector<8x32xf32> -> vector<8x32xf32>
    %c0_3 = arith.constant 0 : index
    %c0_4 = arith.constant 0 : index
    %3 = vector.load %arg3[%c0_3, %c0_4] : memref<1x32xf32, #tpu.memory_space<vmem>>, vector<1x32xf32>
    %4 = vector.broadcast %3 : vector<1x32xf32> to vector<8x32xf32>
    %5 = arith.addf %2, %4 : vector<8x32xf32>
    %cst_5 = arith.constant 0.000000e+00 : f32
    %6 = vector.broadcast %cst_5 : f32 to vector<8x32xf32>
    %7 = arith.maximumf %5, %6 : vector<8x32xf32>
    %c0_6 = arith.constant 0 : index
    %c0_7 = arith.constant 0 : index
    %8 = vector.load %arg4[%c0_6, %c0_7] : memref<32x512xf32, #tpu.memory_space<vmem>>, vector<32x512xf32>
    %cst_8 = arith.constant dense<0.000000e+00> : vector<8x512xf32>
    %9 = tpu.matmul %7, %8, %cst_8 {dimension_numbers = #tpu.dot_dimension_numbers<[1], [0], [0], [1], [0, 0, 1, 1], [], []>} : vector<8x32xf32>, vector<32x512xf32>, vector<8x512xf32> -> vector<8x512xf32>
    %c0_9 = arith.constant 0 : index
    %c0_10 = arith.constant 0 : index
    %10 = vector.load %arg5[%c0_9, %c0_10] : memref<1x512xf32, #tpu.memory_space<vmem>>, vector<1x512xf32>
    %11 = vector.broadcast %10 : vector<1x512xf32> to vector<8x512xf32>
    %12 = arith.addf %9, %11 : vector<8x512xf32>
    %cst_11 = arith.constant 0.000000e+00 : f32
    %13 = vector.broadcast %cst_11 : f32 to vector<8x512xf32>
    %14 = arith.maximumf %12, %13 : vector<8x512xf32>
    %c0_12 = arith.constant 0 : index
    %c0_13 = arith.constant 0 : index
    %15 = vector.load %arg6[%c0_12, %c0_13] : memref<512x16xf32, #tpu.memory_space<vmem>>, vector<512x16xf32>
    %cst_14 = arith.constant dense<0.000000e+00> : vector<8x16xf32>
    %16 = tpu.matmul %14, %15, %cst_14 {dimension_numbers = #tpu.dot_dimension_numbers<[1], [0], [0], [1], [0, 0, 1, 1], [], []>} : vector<8x512xf32>, vector<512x16xf32>, vector<8x16xf32> -> vector<8x16xf32>
    %c0_15 = arith.constant 0 : index
    %c0_16 = arith.constant 0 : index
    %17 = vector.load %arg7[%c0_15, %c0_16] : memref<1x16xf32, #tpu.memory_space<vmem>>, vector<1x16xf32>
    %18 = vector.broadcast %17 : vector<1x16xf32> to vector<8x16xf32>
    %19 = arith.addf %16, %18 : vector<8x16xf32>
    %c0_17 = arith.constant 0 : index
    %c0_18 = arith.constant 0 : index
    %20 = vector.load %arg8[%c0_17, %c0_18] : memref<8x16xf32, #tpu.memory_space<vmem>>, vector<8x16xf32>
    tpu.vector_store %arg8[%c0_17, %c0_18], %19 {strides = array<i32>} : memref<8x16xf32, #tpu.memory_space<vmem>>, vector<8x16xf32>,
    return
  }
  func.func @transform_0(%arg0: i32) -> (i32, i32) {
    %c0_i32 = arith.constant 0 : i32
    %c0_i32_0 = arith.constant 0 : i32
    return %arg0, %c0_i32 : i32, i32
  }
  func.func @transform_1(%arg0: i32) -> (i32, i32) {
    %c0_i32 = arith.constant 0 : i32
    %c0_i32_0 = arith.constant 0 : i32
    %c0_i32_1 = arith.constant 0 : i32
    return %c0_i32, %c0_i32_0 : i32, i32
  }
  func.func @transform_2(%arg0: i32) -> (i32, i32) {
    %c0_i32 = arith.constant 0 : i32
    %c0_i32_0 = arith.constant 0 : i32
    %c0_i32_1 = arith.constant 0 : i32
    return %c0_i32, %c0_i32_0 : i32, i32
  }
  func.func @transform_3(%arg0: i32) -> (i32, i32) {
    %c0_i32 = arith.constant 0 : i32
    %c0_i32_0 = arith.constant 0 : i32
    %c0_i32_1 = arith.constant 0 : i32
    return %c0_i32, %c0_i32_0 : i32, i32
  }
  func.func @transform_4(%arg0: i32) -> (i32, i32) {
    %c0_i32 = arith.constant 0 : i32
    %c0_i32_0 = arith.constant 0 : i32
    %c0_i32_1 = arith.constant 0 : i32
    return %c0_i32, %c0_i32_0 : i32, i32
  }
  func.func @transform_5(%arg0: i32) -> (i32, i32) {
    %c0_i32 = arith.constant 0 : i32
    %c0_i32_0 = arith.constant 0 : i32
    %c0_i32_1 = arith.constant 0 : i32
    return %c0_i32, %c0_i32_0 : i32, i32
  }
  func.func @transform_6(%arg0: i32) -> (i32, i32) {
    %c0_i32 = arith.constant 0 : i32
    %c0_i32_0 = arith.constant 0 : i32
    %c0_i32_1 = arith.constant 0 : i32
    return %c0_i32, %c0_i32_0 : i32, i32
  }
  func.func @transform_7(%arg0: i32) -> (i32, i32) {
    %c0_i32 = arith.constant 0 : i32
    %c0_i32_0 = arith.constant 0 : i32
    return %arg0, %c0_i32 : i32, i32
  }
}

</mosaic_0001>

<bundles_post_ra>
// kernel: tpu_custom_call.1
= control target key start
LH: loop header
LB: loop body
LE: loop exit
PB: predicated region body
PF: predicated region fallthrough
CT: control target
= control target key end

     0   :  { %vm43_vm0 = vcmask 1040384   ;;  %v650_v1 = vmov 0.0   ;;  %vm651_vm1 = vmmov 0   ;;  %s960_s0 = inlined_call_operand.vmem [shape: f32[8,25], index: 0, kind: input, shape index: {}]   ;;  %s961_s1 = inlined_call_operand.vmem [shape: f32[25,32], index: 1, kind: input, shape index: {}]   ;;  %s962_s2 = inlined_call_operand.vmem [shape: f32[1,32], index: 2, kind: input, shape index: {}]   ;;  %s963_s3 = inlined_call_operand.vmem [shape: f32[32,512], index: 3, kind: input, shape index: {}]   ;;  %s964_s4 = inlined_call_operand.vmem [shape: f32[1,512], index: 4, kind: input, shape index: {}]   ;;  %s965_s5 = inlined_call_operand.vmem [shape: f32[512,16], index: 5, kind: input, shape index: {}]   ;;  %s966_s6 = inlined_call_operand.vmem [shape: f32[1,16], index: 6, kind: input, shape index: {}]   ;;  %s967_s7 = inlined_call_operand.hbm [shape: f32[8,16], index: 7, kind: output, shape index: {}]  }
   0x1   :  { %v31_v0 = vld [vmem:[%s961_s1 + $0x18] sm:$0x1]  ;;  %614 = vmatprep.subr.mxu0 %v650_v1  ;;  %v30_v2 = vld [vmem:[%s961_s1 + $0x10] sm:$0xff]  ;;  %v131_v3 = vld [vmem:[%s963_s3 + $0x68] sm:$0xff]  ;;  %224 = vmatprep.mubr.f32.mxu1 %v650_v1 }
   0x2   :  { %615 = vmatpush3.msk.msra.mxu0 %vm43_vm0, %v31_v0  ;;  %622 = vmatprep.mubr.msk.f32.mxu0 %vm651_vm1, %v650_v1  ;;  %v130_v4 = vld [vmem:[%s963_s3 + $0x60] sm:$0xff]  ;;  %v29_v5 = vld [vmem:[%s961_s1 + $0x8] sm:$0xff] }
   0x3   :  { %616 = vmatprep.subr.mxu0 %v650_v1  ;;  %184 = vmatprep.subr.mxu1 %v131_v3  ;;  %v127_v6 = vld [vmem:[%s963_s3 + $0x48] sm:$0xff] }
   0x4   :  { %617 = vmatpush3.msra.mxu0 %v30_v2  ;;  %185 = vmatpush1.msra.mxu1 %v130_v4 }
   0x5   :  { %12 = vsyncpa [#allocation3], 0  ;;  %618 = vmatprep.subr.mxu0 %v650_v1  ;;  %v28_v7 = vld [vmem:[%s961_s1] sm:$0xff]  ;;  %186 = vmatprep.subr.mxu1 %v127_v6  ;;  %vm39_vm2 = vcmask 203776   ;;  %v133_v9 = vld [vmem:[%s963_s3 + $0x78] sm:$0xff]  ;;  %vm156_vm3 = vcmask 261120  }
   0x6   :  { %619 = vmatpush3.msra.mxu0 %v29_v5  ;;  %v27_v8 = vld [vmem:[%s960_s0] sm:$0xff]  ;;  %v132_v10 = vld [vmem:[%s963_s3 + $0x70] sm:$0xff]  ;;  %v129_v11 = vld [vmem:[%s963_s3 + $0x58] sm:$0xff]  ;;  %s652_s15 = smov [#allocation2]   ;;  %vm517_vm4 = vcmask 130048  }
   0x7   :  { %620 = vmatprep.subr.mxu0 %v650_v1  ;;  %v126_v12 = vld [vmem:[%s963_s3 + $0x40] sm:$0xff]  ;;  %v128_v13 = vld [vmem:[%s963_s3 + $0x50] sm:$0xff]  ;;  %v123_v14 = vld [vmem:[%s963_s3 + $0x28] sm:$0xff]  ;;  %s525_s16 = sshll.u32 %s652_s15, 4  ;;  %s526_s16 = int_to_ptr.vmem [resolvable:$true] %s525_s16 }
   0x8   :  { %621 = vmatpush3.msra.mxu0 %v28_v7  ;;  %187 = vmatpush1.msra.mxu1 %v126_v12  ;;  %v125_v15 = vld [vmem:[%s963_s3 + $0x38] sm:$0xff]  ;;  %v122_v16 = vld [vmem:[%s963_s3 + $0x20] sm:$0xff]  ;;  %v124_v17 = vld [vmem:[%s963_s3 + $0x30] sm:$0xff]  ;;  %s628_s17 = scalar_lea.vmem %s526_s16, 128  ;;  %p633_p1 = scmp.lt.s32.totalorder %s526_s16, %s526_s16 }
   0x9   :  { %623 = vmatmul.mubr.msk.f32.vlgmr.msra.gmra.mxu0 %vm39_vm2, %v27_v8  ;;  %255 = vmatprep.subr.mxu0 %v133_v9  ;;  %v119_v18 = vld [vmem:[%s963_s3 + $0x8] sm:$0xff]  ;;  %v121_v19 = vld [vmem:[%s963_s3 + $0x18] sm:$0xff]  ;;  %v118_v20 = vld [vmem:[%s963_s3] sm:$0xff]  ;;  %p629_p0 = scmp.ne.s32.totalorder %s526_s16, %s628_s17  ;;  %p634_p2 = scmp.lt.s32.totalorder %s628_s17, %s628_s17 }
   0xa   :  { %256 = vmatpush1.msra.mxu0 %v132_v10  ;;  %295 = vmatprep.mubr.f32.mxu0 %v650_v1  ;;  %v120_v21 = vld [vmem:[%s963_s3 + $0x10] sm:$0xff]  ;;  %v337_v22 = vld [vmem:[%s965_s5 + $0xf8] sm:$0xff]  ;;  %v533_v24 = vld [vmem:[%s962_s2] ss:$0 sm:$0xff] }
   0xb   :  { %257 = vmatprep.subr.mxu0 %v129_v11  ;;  %188 = vmatprep.subr.mxu1 %v123_v14  ;;  %v369_v23 = vld [vmem:[%s965_s5 + $0x1f8] sm:$0xff]  ;;  %v336_v31 = vld [vmem:[%s965_s5 + $0xf0] sm:$0xff]  ;;  %v335_v35 = vld [vmem:[%s965_s5 + $0xe8] sm:$0xff]  ;;  %p635_p3 = por %p634_p2, %p633_p1 }
   0xc   :  { %258 = vmatpush1.msra.mxu0 %v128_v13  ;;  %189 = vmatpush1.msra.mxu1 %v122_v16  ;;  %v321_v29 = vld [vmem:[%s965_s5 + $0x78] sm:$0xff]  ;;  %v368_v32 = vld [vmem:[%s965_s5 + $0x1f0] sm:$0xff]  ;;  %v367_v36 = vld [vmem:[%s965_s5 + $0x1e8] sm:$0xff] }
   0xd   :  { %259 = vmatprep.subr.mxu0 %v125_v15  ;;  %190 = vmatprep.subr.mxu1 %v119_v18  ;;  %v353_v30 = vld [vmem:[%s965_s5 + $0x178] sm:$0xff]  ;;  %v320_v33 = vld [vmem:[%s965_s5 + $0x70] sm:$0xff]  ;;  %v319_v37 = vld [vmem:[%s965_s5 + $0x68] sm:$0xff]  ;;  %p636_p4 = pnand %p635_p3, %p629_p0 }
   0xe   :  { %260 = vmatpush1.msra.mxu0 %v124_v17  ;;  %191 = vmatpush1.msra.mxu1 %v118_v20  ;;  %v352_v34 = vld [vmem:[%s965_s5 + $0x170] sm:$0xff]  ;;  %v351_v38 = vld [vmem:[%s965_s5 + $0x168] sm:$0xff]  ;;  %v334_v39 = vld [vmem:[%s965_s5 + $0xe0] sm:$0xff] }
   0xf   :  { %261 = vmatprep.subr.mxu0 %v121_v19  ;;  %544 = vmatprep.subr.mxu1 %v337_v22  ;;  %v366_v40 = vld [vmem:[%s965_s5 + $0x1e0] sm:$0xff]  ;;  %v333_v43 = vld [vmem:[%s965_s5 + $0xd8] sm:$0xff]  ;;  %v332_v47 = vld [vmem:[%s965_s5 + $0xd0] sm:$0xff] }
  0x10   :  { %262 = vmatpush1.msra.mxu0 %v120_v21  ;;  %v318_v41 = vld [vmem:[%s965_s5 + $0x60] sm:$0xff]  ;;  %v365_v44 = vld [vmem:[%s965_s5 + $0x1d8] sm:$0xff]  ;;  %v364_v48 = vld [vmem:[%s965_s5 + $0x1d0] sm:$0xff] }
  0x11   :  { %579 = vmatprep.subr.mxu0 %v369_v23  ;;  %v350_v42 = vld [vmem:[%s965_s5 + $0x160] sm:$0xff]  ;;  %v317_v45 = vld [vmem:[%s965_s5 + $0x58] sm:$0xff]  ;;  %v316_v49 = vld [vmem:[%s965_s5 + $0x50] sm:$0xff] }
  0x12   :  { %v349_v46 = vld [vmem:[%s965_s5 + $0x158] sm:$0xff]  ;;  %v348_v50 = vld [vmem:[%s965_s5 + $0x150] sm:$0xff]  ;;  %v331_v51 = vld [vmem:[%s965_s5 + $0xc8] sm:$0xff] }
  0x13   :  { %v363_v52 = vld [vmem:[%s965_s5 + $0x1c8] sm:$0xff]  ;;  %v330_v55 = vld [vmem:[%s965_s5 + $0xc0] sm:$0xff]  ;;  %v329_v59 = vld [vmem:[%s965_s5 + $0xb8] sm:$0xff] }
  0x14   :  { %v315_v53 = vld [vmem:[%s965_s5 + $0x48] sm:$0xff]  ;;  %v362_v56 = vld [vmem:[%s965_s5 + $0x1c0] sm:$0xff]  ;;  %v361_v60 = vld [vmem:[%s965_s5 + $0x1b8] sm:$0xff] }
  0x15   :  { %v347_v54 = vld [vmem:[%s965_s5 + $0x148] sm:$0xff]  ;;  %v314_v57 = vld [vmem:[%s965_s5 + $0x40] sm:$0xff]  ;;  %v313_v61 = vld [vmem:[%s965_s5 + $0x38] sm:$0xff] }
  0x16   :  { %v346_v58 = vld [vmem:[%s965_s5 + $0x140] sm:$0xff]  ;;  %v345_v62 = vld [vmem:[%s965_s5 + $0x138] sm:$0xff]  ;;  %v328_v63 = vld [vmem:[%s965_s5 + $0xb0] sm:$0xff] }
  0x17   :  { %v360_v0 = vld [vmem:[%s965_s5 + $0x1b0] sm:$0xff]  ;;  %v327_v3 = vld [vmem:[%s965_s5 + $0xa8] sm:$0xff]  ;;  %v326_v7 = vld [vmem:[%s965_s5 + $0xa0] sm:$0xff] }
  0x18   :  { %v312_v1 = vld [vmem:[%s965_s5 + $0x30] sm:$0xff]  ;;  %v359_v4 = vld [vmem:[%s965_s5 + $0x1a8] sm:$0xff]  ;;  %v358_v8 = vld [vmem:[%s965_s5 + $0x1a0] sm:$0xff] }
  0x19   :  { %v344_v2 = vld [vmem:[%s965_s5 + $0x130] sm:$0xff]  ;;  %v311_v5 = vld [vmem:[%s965_s5 + $0x28] sm:$0xff]  ;;  %v310_v9 = vld [vmem:[%s965_s5 + $0x20] sm:$0xff] }
  0x1a   :  { %v343_v6 = vld [vmem:[%s965_s5 + $0x128] sm:$0xff]  ;;  %v342_v10 = vld [vmem:[%s965_s5 + $0x120] sm:$0xff]  ;;  %v325_v11 = vld [vmem:[%s965_s5 + $0x98] sm:$0xff] }
  0x1b   :  { %v357_v12 = vld [vmem:[%s965_s5 + $0x198] sm:$0xff]  ;;  %v324_v15 = vld [vmem:[%s965_s5 + $0x90] sm:$0xff]  ;;  %v323_v19 = vld [vmem:[%s965_s5 + $0x88] sm:$0xff] }
  0x1c   :  { %v309_v13 = vld [vmem:[%s965_s5 + $0x18] sm:$0xff]  ;;  %v356_v16 = vld [vmem:[%s965_s5 + $0x190] sm:$0xff]  ;;  %v355_v20 = vld [vmem:[%s965_s5 + $0x188] sm:$0xff] }
  0x1d   :  { %v341_v14 = vld [vmem:[%s965_s5 + $0x118] sm:$0xff]  ;;  %v308_v17 = vld [vmem:[%s965_s5 + $0x10] sm:$0xff]  ;;  %v307_v21 = vld [vmem:[%s965_s5 + $0x8] sm:$0xff] }
  0x1e   :  { %v340_v18 = vld [vmem:[%s965_s5 + $0x110] sm:$0xff]  ;;  %v339_v22 = vld [vmem:[%s965_s5 + $0x108] sm:$0xff]  ;;  %v322_v23 = vld [vmem:[%s965_s5 + $0x80] sm:$0xff] }
  0xc9   :  { %v113_v25 = vpop.f32.mrf.mxu0 }
  0xca   :  { %v114_v26 = vadd.f32 %v533_v24, %v113_v25  ;;  %v354_v24 = vld [vmem:[%s965_s5 + $0x180] sm:$0xff] }
  0xcb   :  { %v624_v27 = vpop.f32.mrf.mxu0  ;;  %v306_v25 = vld [vmem:[%s965_s5] sm:$0xff] }
  0xcc   :  { %v117_v28 = vmax.f32 %v114_v26, 0.0  ;;  %v338_v26 = vld [vmem:[%s965_s5 + $0x100] sm:$0xff]  ;;  %v136_v27 = vlaneseq }
  0xce   :  { %536 = vmatmul.mubr.msk.f32.vlgmr.msra.gmra.mxu1 %vm156_vm3, %v117_v28  ;;  %537 = vmatmul.mubr.msk.f32.vlgmr.msra.gmra.mxu0 %vm156_vm3, %v117_v28  ;;  %v137_v28 = vshrl.u32 %v136_v27, 7 }
  0xcf   :  { %545 = vmatpush3.msra.mxu1 %v321_v29  ;;  %580 = vmatpush3.msra.mxu0 %v353_v30 }
  0xd0   :  { %546 = vmatprep.subr.mxu1 %v336_v31  ;;  %581 = vmatprep.subr.mxu0 %v368_v32  ;;  %v138_v29 = vsub.s32 0, %v137_v28  ;;  %v146_v30 = vsub.s32 2, %v137_v28  ;;  %v134_v31 = vld [vmem:[%s964_s4] sm:$0xf]  ;;  %v142_v32 = vsub.s32 1, %v137_v28 }
  0xd1   :  { %547 = vmatpush3.msra.mxu1 %v320_v33  ;;  %582 = vmatpush3.msra.mxu0 %v352_v34  ;;  %v150_v33 = vsub.s32 3, %v137_v28 }
  0xd2   :  { %548 = vmatprep.subr.mxu1 %v335_v35  ;;  %583 = vmatprep.subr.mxu0 %v367_v36  ;;  %v139_v34 = vrot.slane %v134_v31, %v138_v29  ;;  %v147_v35 = vrot.slane %v134_v31, %v146_v30  ;;  %v143_v36 = vrot.slane %v134_v31, %v142_v32 }
  0xd3   :  { %549 = vmatpush3.msra.mxu1 %v319_v37  ;;  %584 = vmatpush3.msra.mxu0 %v351_v38  ;;  %v151_v37 = vrot.slane %v134_v31, %v150_v33 }
  0xd4   :  { %550 = vmatprep.subr.mxu1 %v334_v39  ;;  %585 = vmatprep.subr.mxu0 %v366_v40 }
  0xd5   :  { %551 = vmatpush3.msra.mxu1 %v318_v41  ;;  %586 = vmatpush3.msra.mxu0 %v350_v42 }
  0xd6   :  { %552 = vmatprep.subr.mxu1 %v333_v43  ;;  %587 = vmatprep.subr.mxu0 %v365_v44 }
  0xd7   :  { %553 = vmatpush3.msra.mxu1 %v317_v45  ;;  %588 = vmatpush3.msra.mxu0 %v349_v46 }
  0xd8   :  { %554 = vmatprep.subr.mxu1 %v332_v47  ;;  %589 = vmatprep.subr.mxu0 %v364_v48 }
  0xd9   :  { %555 = vmatpush3.msra.mxu1 %v316_v49  ;;  %590 = vmatpush3.msra.mxu0 %v348_v50 }
  0xda   :  { %556 = vmatprep.subr.mxu1 %v331_v51  ;;  %591 = vmatprep.subr.mxu0 %v363_v52  ;;  %v538_v52 = vld [vmem:[%s966_s6] ss:$0 sm:$0xff] }
  0xdb   :  { %557 = vmatpush3.msra.mxu1 %v315_v53  ;;  %592 = vmatpush3.msra.mxu0 %v347_v54 }
  0xdc   :  { %558 = vmatprep.subr.mxu1 %v330_v55  ;;  %593 = vmatprep.subr.mxu0 %v362_v56 }
  0xdd   :  { %559 = vmatpush3.msra.mxu1 %v314_v57  ;;  %594 = vmatpush3.msra.mxu0 %v346_v58 }
  0xde   :  { %560 = vmatprep.subr.mxu1 %v329_v59  ;;  %595 = vmatprep.subr.mxu0 %v361_v60 }
  0xdf   :  { %561 = vmatpush3.msra.mxu1 %v313_v61  ;;  %596 = vmatpush3.msra.mxu0 %v345_v62 }
  0xe0   :  { %562 = vmatprep.subr.mxu1 %v328_v63  ;;  %597 = vmatprep.subr.mxu0 %v360_v0 }
  0xe1   :  { %563 = vmatpush3.msra.mxu1 %v312_v1  ;;  %598 = vmatpush3.msra.mxu0 %v344_v2 }
  0xe2   :  { %564 = vmatprep.subr.mxu1 %v327_v3  ;;  %599 = vmatprep.subr.mxu0 %v359_v4 }
  0xe3   :  { %565 = vmatpush3.msra.mxu1 %v311_v5  ;;  %600 = vmatpush3.msra.mxu0 %v343_v6 }
  0xe4   :  { %566 = vmatprep.subr.mxu1 %v326_v7  ;;  %601 = vmatprep.subr.mxu0 %v358_v8 }
  0xe5   :  { %567 = vmatpush3.msra.mxu1 %v310_v9  ;;  %602 = vmatpush3.msra.mxu0 %v342_v10 }
  0xe6   :  { %568 = vmatprep.subr.mxu1 %v325_v11  ;;  %603 = vmatprep.subr.mxu0 %v357_v12 }
  0xe7   :  { %569 = vmatpush3.msra.mxu1 %v309_v13  ;;  %604 = vmatpush3.msra.mxu0 %v341_v14 }
  0xe8   :  { %570 = vmatprep.subr.mxu1 %v324_v15  ;;  %605 = vmatprep.subr.mxu0 %v356_v16 }
  0xe9   :  { %571 = vmatpush3.msra.mxu1 %v308_v17  ;;  %606 = vmatpush3.msra.mxu0 %v340_v18 }
  0xea   :  { %572 = vmatprep.subr.mxu1 %v323_v19  ;;  %607 = vmatprep.subr.mxu0 %v355_v20 }
  0xeb   :  { %573 = vmatpush3.msra.mxu1 %v307_v21  ;;  %608 = vmatpush3.msra.mxu0 %v339_v22 }
  0xec   :  { %574 = vmatprep.subr.mxu1 %v322_v23  ;;  %609 = vmatprep.subr.mxu0 %v354_v24 }
  0xed   :  { %575 = vmatpush3.msra.mxu1 %v306_v25  ;;  %610 = vmatpush3.msra.mxu0 %v338_v26 }
 0x18e   :  { %v226_v38 = vpop.f32.mrf.mxu1  ;;  %v297_v39 = vpop.f32.mrf.mxu0 }
 0x18f   :  { %v227_v40 = vadd.f32 %v226_v38, %v139_v34  ;;  %v298_v41 = vadd.f32 %v297_v39, %v147_v35 }
 0x190   :  { %v228_v42 = vpop.f32.mrf.mxu1  ;;  %v299_v43 = vpop.f32.mrf.mxu0 }
 0x191   :  { %v229_v44 = vadd.f32 %v228_v42, %v143_v36  ;;  %v300_v45 = vadd.f32 %v299_v43, %v151_v37  ;;  %v302_v48 = vmax.f32 %v227_v40, 0.0  ;;  %v304_v49 = vmax.f32 %v298_v41, 0.0 }
 0x193   :  { %v303_v46 = vmax.f32 %v229_v44, 0.0  ;;  %v305_v47 = vmax.f32 %v300_v45, 0.0 }
 0x195   :  { %441 = vmatprep.mubr.f32.mxu1 %v303_v46  ;;  %511 = vmatprep.mubr.f32.mxu0 %v305_v47 }
 0x196   :  { %442 = vmatmul.mubr.f32.vlgmr.msra.gmra.mxu1 %v302_v48  ;;  %512 = vmatmul.mubr.f32.vlgmr.msra.gmra.mxu0 %v304_v49 }
 0x256   :  { %v576_v50 = vpop.f32.mrf.mxu1  ;;  %v611_v51 = vpop.f32.mrf.mxu0 }
 0x258   :  { %v577_v53 = vpop.f32.mrf.mxu1  ;;  %v612_v54 = vpop.f32.mrf.mxu0 }
 0x259   :  { %v578_v55 = vadd.f32 %v577_v53, %v576_v50  ;;  %v613_v57 = vadd.f32 %v612_v54, %v611_v51 }
 0x25b   :  { %v444_v56 = vadd.f32 %v578_v55, %v538_v52 }
 0x25d   :  { %v514_v58 = vadd.f32 %v613_v57, %v444_v56 }
 0x25f   :  { %518 = vst.msk [vmem:[#allocation2] sm:$0xff] %vm517_vm4, %v514_v58 }
 0x260   :  { %639 = shalt.err (!%p636_p4)
}
 0x261   :  { %528 = dma.vmem_to_hbm [thread:$0]  %s526_s16, 128, %s967_s7, [#allocation3]  }
 0x262   :  { %648 = dma.done.wait [#allocation3], 128  }
 0x263   :  { %649 = vsyncadd [#allocation3], 4294967168 }
 0x264   :  { %532 = vsyncpa [#allocation3], 1 }

</bundles_post_ra>
